<compile_context>
chip_gen: v7x
topology: tpu7x:2x2x1
jax: 0.10.0
libtpu: 0.0.40
codegen_flags: <defaults>
</compile_context>

<pallas_src>
import functools

import jax
import jax.numpy as jnp
from jax.experimental import pallas as pl
from jax.experimental.pallas import tpu as pltpu

HIDDEN_DIM = 40
NUM_LAYERS = 8
PAD = 128  # lane-dense padded feature width for activations / weights


def _round_up(x, m):
    return (x + m - 1) // m * m


def _mlp_kernel(x_ref, w_ref, b_ref, out_ref):
    """One batch tile through all 8 layers.

    x_ref:   [TB, 128]       padded activations (lane-dense)
    w_ref:   [8, 128, 128]   zero-padded, pre-transposed weights (in, out)
    b_ref:   [8, 1, 128]     zero-padded biases
    out_ref: [TB, 128]       padded output (real out_dim sliced in wrapper)
    """
    h = x_ref[...]
    # Layers 1..7: matmul + bias + ReLU (statically unrolled).
    for layer in range(NUM_LAYERS - 1):
        h = jnp.dot(h, w_ref[layer], preferred_element_type=jnp.float32)
        h = jnp.maximum(h + b_ref[layer], 0.0)
    # Layer 8: matmul + bias, no ReLU.
    out = jnp.dot(h, w_ref[NUM_LAYERS - 1], preferred_element_type=jnp.float32)
    out = out + b_ref[NUM_LAYERS - 1]
    out_ref[...] = out.astype(out_ref.dtype)


@functools.partial(jax.jit, static_argnames=("out_dim",))
def mlp_forward(x, w_stack, b_stack, *, out_dim):
    """x: [B, input_dim] f32.
    w_stack: [8, 128, 128] f32 (zero-padded, layout [in, out] per layer).
    b_stack: [8, 1, 128] f32 (zero-padded).
    Returns [B, out_dim] f32."""
    batch, in_dim = x.shape

    # Batch tile: multiple of 8 sublanes.  Cap at 512 so a double-buffered
    # f32 [TB, 128] activation tile (+ the 512 KiB resident weight slab) stays
    # tiny even under v7x's 64 MiB VMEM.
    tb = min(512, _round_up(max(batch, 8), 8))
    b_pad = _round_up(batch, tb)

    # Lane-dense, zero-padded input slab.
    x_p = jnp.zeros((b_pad, PAD), jnp.float32).at[:batch, :in_dim].set(x)

    grid = (b_pad // tb,)
    out_p = pl.pallas_call(
        _mlp_kernel,
        out_shape=jax.ShapeDtypeStruct((b_pad, PAD), jnp.float32),
        grid=grid,
        in_specs=[
            # Activations: tiled over the batch grid (double-buffered).
            pl.BlockSpec((tb, PAD), lambda i: (i, 0)),
            # Weights / biases: constant block index -> resident in VMEM.
            pl.BlockSpec((NUM_LAYERS, PAD, PAD), lambda i: (0, 0, 0)),
            pl.BlockSpec((NUM_LAYERS, 1, PAD), lambda i: (0, 0, 0)),
        ],
        out_specs=pl.BlockSpec((tb, PAD), lambda i: (i, 0)),
        compiler_params=pltpu.CompilerParams(
            dimension_semantics=("parallel",)),
    )(x_p, w_stack, b_stack)

    return out_p[:batch, :out_dim]


def init_params(key, input_dim, output_dim, hidden_dim):
    """Deterministic init matching nn.Linear (U(-1/sqrt(fan_in), +1/sqrt(fan_in))).

    Returns a list of (W_t [in, out], b [out]) per layer (unpadded)."""
    fan_ins = [input_dim] + [hidden_dim] * (NUM_LAYERS - 1)
    fan_outs = [hidden_dim] * (NUM_LAYERS - 1) + [output_dim]
    params = []
    for fan_in, fan_out in zip(fan_ins, fan_outs):
        key, kw, kb = jax.random.split(key, 3)
        bound = 1.0 / (fan_in ** 0.5)
        w_t = jax.random.uniform(kw, (fan_in, fan_out), jnp.float32, -bound, bound)
        b = jax.random.uniform(kb, (fan_out,), jnp.float32, -bound, bound)
        params.append((w_t, b))
    return params


def pack_params(params):
    """Zero-pad every layer to [128, 128] / [1, 128] and stack into two slabs.

    Zero rows/cols guarantee padded lanes stay exactly 0 through all layers."""
    w_stack = jnp.zeros((NUM_LAYERS, PAD, PAD), jnp.float32)
    b_stack = jnp.zeros((NUM_LAYERS, 1, PAD), jnp.float32)
    for i, (w, b) in enumerate(params):
        fi, fo = w.shape
        w_stack = w_stack.at[i, :fi, :fo].set(w)
        b_stack = b_stack.at[i, 0, :fo].set(b)
    return w_stack, b_stack


def reference_forward(x, params):
    """Pure-JAX reference for correctness check."""
    h = x
    for i, (w, b) in enumerate(params):
        h = h @ w + b
        if i != len(params) - 1:
            h = jnp.maximum(h, 0.0)
    return h


if __name__ == "__main__":
    key = jax.random.PRNGKey(0)
    batch, input_dim, output_dim = 8, 16, 4

    k_x, k_p = jax.random.split(key)
    x = jax.random.normal(k_x, (batch, input_dim), jnp.float32)
    params = init_params(k_p, input_dim, output_dim, HIDDEN_DIM)
    w_stack, b_stack = pack_params(params)

    out = mlp_forward(x, w_stack, b_stack, out_dim=output_dim)
    out = jax.block_until_ready(out)

    ref = reference_forward(x, params)
    assert out.shape == (batch, output_dim)
    assert jnp.allclose(out, ref, atol=1e-4, rtol=1e-4), "mismatch vs reference"

    print("KERNEL_OK")
</pallas_src>

<mosaic_0001>
module attributes {stable_mosaic.version = 11 : i64} {
  func.func @_mlp_kernel(%arg0: i32, %arg1: memref<8x128xf32, #tpu.memory_space<vmem>>, %arg2: memref<8x128x128xf32, #tpu.memory_space<vmem>>, %arg3: memref<8x1x128xf32, #tpu.memory_space<vmem>>, %arg4: memref<8x128xf32, #tpu.memory_space<vmem>>) attributes {dimension_semantics = [#tpu.dimension_semantics<parallel>], iteration_bounds = array<i64: 1>, scalar_prefetch = 0 : i64, scratch_operands = 0 : i64, tpu.core_type = #tpu.core_type<tc>, window_params = [{transform_indices = @transform_0, window_bounds = array<i64: 8, 128>}, {pipeline_mode = #tpu.pipeline_mode<synchronous>, transform_indices = @transform_1, window_bounds = array<i64: 8, 128, 128>}, {pipeline_mode = #tpu.pipeline_mode<synchronous>, transform_indices = @transform_2, window_bounds = array<i64: 8, 1, 128>}, {transform_indices = @transform_3, window_bounds = array<i64: 8, 128>}]} {
    %c0 = arith.constant 0 : index
    %c0_0 = arith.constant 0 : index
    %0 = vector.load %arg1[%c0, %c0_0] : memref<8x128xf32, #tpu.memory_space<vmem>>, vector<8x128xf32>
    %c0_1 = arith.constant 0 : index
    %c0_2 = arith.constant 0 : index
    %c0_3 = arith.constant 0 : index
    %1 = vector.load %arg2[%c0_1, %c0_2, %c0_3] : memref<8x128x128xf32, #tpu.memory_space<vmem>>, vector<1x128x128xf32>
    %2 = vector.shape_cast %1 : vector<1x128x128xf32> to vector<128x128xf32>
    %cst = arith.constant dense<0.000000e+00> : vector<8x128xf32>
    %3 = tpu.matmul %0, %2, %cst {dimension_numbers = #tpu.dot_dimension_numbers<[1], [0], [0], [1], [0, 0, 1, 1], [], []>} : vector<8x128xf32>, vector<128x128xf32>, vector<8x128xf32> -> vector<8x128xf32>
    %c0_4 = arith.constant 0 : index
    %c0_5 = arith.constant 0 : index
    %c0_6 = arith.constant 0 : index
    %4 = vector.load %arg3[%c0_4, %c0_5, %c0_6] : memref<8x1x128xf32, #tpu.memory_space<vmem>>, vector<1x1x128xf32>
    %5 = vector.shape_cast %4 : vector<1x1x128xf32> to vector<1x128xf32>
    %6 = vector.broadcast %5 : vector<1x128xf32> to vector<8x128xf32>
    %7 = arith.addf %3, %6 : vector<8x128xf32>
    %cst_7 = arith.constant 0.000000e+00 : f32
    %8 = vector.broadcast %cst_7 : f32 to vector<8x128xf32>
    %9 = arith.maximumf %7, %8 : vector<8x128xf32>
    %c1 = arith.constant 1 : index
    %c0_8 = arith.constant 0 : index
    %c0_9 = arith.constant 0 : index
    %10 = vector.load %arg2[%c1, %c0_8, %c0_9] : memref<8x128x128xf32, #tpu.memory_space<vmem>>, vector<1x128x128xf32>
    %11 = vector.shape_cast %10 : vector<1x128x128xf32> to vector<128x128xf32>
    %cst_10 = arith.constant dense<0.000000e+00> : vector<8x128xf32>
    %12 = tpu.matmul %9, %11, %cst_10 {dimension_numbers = #tpu.dot_dimension_numbers<[1], [0], [0], [1], [0, 0, 1, 1], [], []>} : vector<8x128xf32>, vector<128x128xf32>, vector<8x128xf32> -> vector<8x128xf32>
    %c1_11 = arith.constant 1 : index
    %c0_12 = arith.constant 0 : index
    %c0_13 = arith.constant 0 : index
    %13 = vector.load %arg3[%c1_11, %c0_12, %c0_13] : memref<8x1x128xf32, #tpu.memory_space<vmem>>, vector<1x1x128xf32>
    %14 = vector.shape_cast %13 : vector<1x1x128xf32> to vector<1x128xf32>
    %15 = vector.broadcast %14 : vector<1x128xf32> to vector<8x128xf32>
    %16 = arith.addf %12, %15 : vector<8x128xf32>
    %cst_14 = arith.constant 0.000000e+00 : f32
    %17 = vector.broadcast %cst_14 : f32 to vector<8x128xf32>
    %18 = arith.maximumf %16, %17 : vector<8x128xf32>
    %c2 = arith.constant 2 : index
    %c0_15 = arith.constant 0 : index
    %c0_16 = arith.constant 0 : index
    %19 = vector.load %arg2[%c2, %c0_15, %c0_16] : memref<8x128x128xf32, #tpu.memory_space<vmem>>, vector<1x128x128xf32>
    %20 = vector.shape_cast %19 : vector<1x128x128xf32> to vector<128x128xf32>
    %cst_17 = arith.constant dense<0.000000e+00> : vector<8x128xf32>
    %21 = tpu.matmul %18, %20, %cst_17 {dimension_numbers = #tpu.dot_dimension_numbers<[1], [0], [0], [1], [0, 0, 1, 1], [], []>} : vector<8x128xf32>, vector<128x128xf32>, vector<8x128xf32> -> vector<8x128xf32>
    %c2_18 = arith.constant 2 : index
    %c0_19 = arith.constant 0 : index
    %c0_20 = arith.constant 0 : index
    %22 = vector.load %arg3[%c2_18, %c0_19, %c0_20] : memref<8x1x128xf32, #tpu.memory_space<vmem>>, vector<1x1x128xf32>
    %23 = vector.shape_cast %22 : vector<1x1x128xf32> to vector<1x128xf32>
    %24 = vector.broadcast %23 : vector<1x128xf32> to vector<8x128xf32>
    %25 = arith.addf %21, %24 : vector<8x128xf32>
    %cst_21 = arith.constant 0.000000e+00 : f32
    %26 = vector.broadcast %cst_21 : f32 to vector<8x128xf32>
    %27 = arith.maximumf %25, %26 : vector<8x128xf32>
    %c3 = arith.constant 3 : index
    %c0_22 = arith.constant 0 : index
    %c0_23 = arith.constant 0 : index
    %28 = vector.load %arg2[%c3, %c0_22, %c0_23] : memref<8x128x128xf32, #tpu.memory_space<vmem>>, vector<1x128x128xf32>
    %29 = vector.shape_cast %28 : vector<1x128x128xf32> to vector<128x128xf32>
    %cst_24 = arith.constant dense<0.000000e+00> : vector<8x128xf32>
    %30 = tpu.matmul %27, %29, %cst_24 {dimension_numbers = #tpu.dot_dimension_numbers<[1], [0], [0], [1], [0, 0, 1, 1], [], []>} : vector<8x128xf32>, vector<128x128xf32>, vector<8x128xf32> -> vector<8x128xf32>
    %c3_25 = arith.constant 3 : index
    %c0_26 = arith.constant 0 : index
    %c0_27 = arith.constant 0 : index
    %31 = vector.load %arg3[%c3_25, %c0_26, %c0_27] : memref<8x1x128xf32, #tpu.memory_space<vmem>>, vector<1x1x128xf32>
    %32 = vector.shape_cast %31 : vector<1x1x128xf32> to vector<1x128xf32>
    %33 = vector.broadcast %32 : vector<1x128xf32> to vector<8x128xf32>
    %34 = arith.addf %30, %33 : vector<8x128xf32>
    %cst_28 = arith.constant 0.000000e+00 : f32
    %35 = vector.broadcast %cst_28 : f32 to vector<8x128xf32>
    %36 = arith.maximumf %34, %35 : vector<8x128xf32>
    %c4 = arith.constant 4 : index
    %c0_29 = arith.constant 0 : index
    %c0_30 = arith.constant 0 : index
    %37 = vector.load %arg2[%c4, %c0_29, %c0_30] : memref<8x128x128xf32, #tpu.memory_space<vmem>>, vector<1x128x128xf32>
    %38 = vector.shape_cast %37 : vector<1x128x128xf32> to vector<128x128xf32>
    %cst_31 = arith.constant dense<0.000000e+00> : vector<8x128xf32>
    %39 = tpu.matmul %36, %38, %cst_31 {dimension_numbers = #tpu.dot_dimension_numbers<[1], [0], [0], [1], [0, 0, 1, 1], [], []>} : vector<8x128xf32>, vector<128x128xf32>, vector<8x128xf32> -> vector<8x128xf32>
    %c4_32 = arith.constant 4 : index
    %c0_33 = arith.constant 0 : index
    %c0_34 = arith.constant 0 : index
    %40 = vector.load %arg3[%c4_32, %c0_33, %c0_34] : memref<8x1x128xf32, #tpu.memory_space<vmem>>, vector<1x1x128xf32>
    %41 = vector.shape_cast %40 : vector<1x1x128xf32> to vector<1x128xf32>
    %42 = vector.broadcast %41 : vector<1x128xf32> to vector<8x128xf32>
    %43 = arith.addf %39, %42 : vector<8x128xf32>
    %cst_35 = arith.constant 0.000000e+00 : f32
    %44 = vector.broadcast %cst_35 : f32 to vector<8x128xf32>
    %45 = arith.maximumf %43, %44 : vector<8x128xf32>
    %c5 = arith.constant 5 : index
    %c0_36 = arith.constant 0 : index
    %c0_37 = arith.constant 0 : index
    %46 = vector.load %arg2[%c5, %c0_36, %c0_37] : memref<8x128x128xf32, #tpu.memory_space<vmem>>, vector<1x128x128xf32>
    %47 = vector.shape_cast %46 : vector<1x128x128xf32> to vector<128x128xf32>
    %cst_38 = arith.constant dense<0.000000e+00> : vector<8x128xf32>
    %48 = tpu.matmul %45, %47, %cst_38 {dimension_numbers = #tpu.dot_dimension_numbers<[1], [0], [0], [1], [0, 0, 1, 1], [], []>} : vector<8x128xf32>, vector<128x128xf32>, vector<8x128xf32> -> vector<8x128xf32>
    %c5_39 = arith.constant 5 : index
    %c0_40 = arith.constant 0 : index
    %c0_41 = arith.constant 0 : index
    %49 = vector.load %arg3[%c5_39, %c0_40, %c0_41] : memref<8x1x128xf32, #tpu.memory_space<vmem>>, vector<1x1x128xf32>
    %50 = vector.shape_cast %49 : vector<1x1x128xf32> to vector<1x128xf32>
    %51 = vector.broadcast %50 : vector<1x128xf32> to vector<8x128xf32>
    %52 = arith.addf %48, %51 : vector<8x128xf32>
    %cst_42 = arith.constant 0.000000e+00 : f32
    %53 = vector.broadcast %cst_42 : f32 to vector<8x128xf32>
    %54 = arith.maximumf %52, %53 : vector<8x128xf32>
    %c6 = arith.constant 6 : index
    %c0_43 = arith.constant 0 : index
    %c0_44 = arith.constant 0 : index
    %55 = vector.load %arg2[%c6, %c0_43, %c0_44] : memref<8x128x128xf32, #tpu.memory_space<vmem>>, vector<1x128x128xf32>
    %56 = vector.shape_cast %55 : vector<1x128x128xf32> to vector<128x128xf32>
    %cst_45 = arith.constant dense<0.000000e+00> : vector<8x128xf32>
    %57 = tpu.matmul %54, %56, %cst_45 {dimension_numbers = #tpu.dot_dimension_numbers<[1], [0], [0], [1], [0, 0, 1, 1], [], []>} : vector<8x128xf32>, vector<128x128xf32>, vector<8x128xf32> -> vector<8x128xf32>
    %c6_46 = arith.constant 6 : index
    %c0_47 = arith.constant 0 : index
    %c0_48 = arith.constant 0 : index
    %58 = vector.load %arg3[%c6_46, %c0_47, %c0_48] : memref<8x1x128xf32, #tpu.memory_space<vmem>>, vector<1x1x128xf32>
    %59 = vector.shape_cast %58 : vector<1x1x128xf32> to vector<1x128xf32>
    %60 = vector.broadcast %59 : vector<1x128xf32> to vector<8x128xf32>
    %61 = arith.addf %57, %60 : vector<8x128xf32>
    %cst_49 = arith.constant 0.000000e+00 : f32
    %62 = vector.broadcast %cst_49 : f32 to vector<8x128xf32>
    %63 = arith.maximumf %61, %62 : vector<8x128xf32>
    %c7 = arith.constant 7 : index
    %c0_50 = arith.constant 0 : index
    %c0_51 = arith.constant 0 : index
    %64 = vector.load %arg2[%c7, %c0_50, %c0_51] : memref<8x128x128xf32, #tpu.memory_space<vmem>>, vector<1x128x128xf32>
    %65 = vector.shape_cast %64 : vector<1x128x128xf32> to vector<128x128xf32>
    %cst_52 = arith.constant dense<0.000000e+00> : vector<8x128xf32>
    %66 = tpu.matmul %63, %65, %cst_52 {dimension_numbers = #tpu.dot_dimension_numbers<[1], [0], [0], [1], [0, 0, 1, 1], [], []>} : vector<8x128xf32>, vector<128x128xf32>, vector<8x128xf32> -> vector<8x128xf32>
    %c7_53 = arith.constant 7 : index
    %c0_54 = arith.constant 0 : index
    %c0_55 = arith.constant 0 : index
    %67 = vector.load %arg3[%c7_53, %c0_54, %c0_55] : memref<8x1x128xf32, #tpu.memory_space<vmem>>, vector<1x1x128xf32>
    %68 = vector.shape_cast %67 : vector<1x1x128xf32> to vector<1x128xf32>
    %69 = vector.broadcast %68 : vector<1x128xf32> to vector<8x128xf32>
    %70 = arith.addf %66, %69 : vector<8x128xf32>
    %c0_56 = arith.constant 0 : index
    %c0_57 = arith.constant 0 : index
    %71 = vector.load %arg4[%c0_56, %c0_57] : memref<8x128xf32, #tpu.memory_space<vmem>>, vector<8x128xf32>
    tpu.vector_store %arg4[%c0_56, %c0_57], %70 {strides = array<i32>} : memref<8x128xf32, #tpu.memory_space<vmem>>, vector<8x128xf32>,
    return
  }
  func.func @transform_0(%arg0: i32) -> (i32, i32) {
    %c0_i32 = arith.constant 0 : i32
    %c0_i32_0 = arith.constant 0 : i32
    return %arg0, %c0_i32 : i32, i32
  }
  func.func @transform_1(%arg0: i32) -> (i32, i32, i32) {
    %c0_i32 = arith.constant 0 : i32
    %c0_i32_0 = arith.constant 0 : i32
    %c0_i32_1 = arith.constant 0 : i32
    %c0_i32_2 = arith.constant 0 : i32
    return %c0_i32, %c0_i32_0, %c0_i32_1 : i32, i32, i32
  }
  func.func @transform_2(%arg0: i32) -> (i32, i32, i32) {
    %c0_i32 = arith.constant 0 : i32
    %c0_i32_0 = arith.constant 0 : i32
    %c0_i32_1 = arith.constant 0 : i32
    %c0_i32_2 = arith.constant 0 : i32
    return %c0_i32, %c0_i32_0, %c0_i32_1 : i32, i32, i32
  }
  func.func @transform_3(%arg0: i32) -> (i32, i32) {
    %c0_i32 = arith.constant 0 : i32
    %c0_i32_0 = arith.constant 0 : i32
    return %arg0, %c0_i32 : i32, i32
  }
}

</mosaic_0001>

<bundles_post_ra>
// kernel: mlp_forward.1
= control target key start
LH: loop header
LB: loop body
LE: loop exit
PB: predicated region body
PF: predicated region fallthrough
CT: control target
= control target key end

     0   :  { %8 = vsyncpa [#allocation3], 0  ;;  %s1453_s12 = smov [#allocation2]   ;;  %s1601_s0 = inlined_call_operand.vmem [shape: f32[8,128], index: 0, kind: input, shape index: {}]   ;;  %s1602_s1 = inlined_call_operand.hbm [shape: f32[8,128,128], index: 1, kind: input, shape index: {}]   ;;  %s1603_s2 = inlined_call_operand.vmem [shape: f32[8,1,128], index: 2, kind: input, shape index: {}]   ;;  %s1604_s3 = inlined_call_operand.vmem [shape: f32[8,128], index: 3, kind: output, shape index: {}]  }
   0x1   :  { %s16_s13 = sshll.u32 %s1453_s12, 4  ;;  %s1429_s16 = scalar_lea.hbm %s1602_s1, 16384  ;;  %s17_s13 = int_to_ptr.vmem [resolvable:$true] %s16_s13 }
   0x2   :  { %p1430_p0 = scmp.ne.s32.totalorder %s1602_s1, %s1429_s16  ;;  %p1433_p1 = scmp.lt.u32.totalorder %s1429_s16, %s1602_s1 }
   0x4   :  { %p1435_p2 = pnand %p1433_p1, %p1430_p0 }
   0x6   :  { %1438 = shalt.err (!%p1435_p2)
}
   0x7   :  { %s1439_s21 = scalar_lea.vmem %s17_s13, 16384  ;;  %p1444_p4 = scmp.lt.s32.totalorder %s17_s13, %s17_s13 }
   0x8   :  { %p1440_p3 = scmp.ne.s32.totalorder %s17_s13, %s1439_s21  ;;  %p1445_p5 = scmp.lt.s32.totalorder %s1439_s21, %s1439_s21 }
   0xa   :  { %p1446_p6 = por %p1445_p5, %p1444_p4 }
   0xc   :  { %p1447_p7 = pnand %p1446_p6, %p1440_p3 }
   0xe   :  { %1450 = shalt.err (!%p1447_p7)
}
   0xf   :  { %s1454_s22 = smov 128   ;;  %s1455_s23 = smov 8  }
  0x10   :  { %22 = dma.hbm_to_vmem [thread:$0]  %s1602_s1, 16384, %s17_s13, [#allocation3], %s1454_s22, %s1454_s22, %s1455_s23  }
  0x11   :  { %1451 = dma.done.wait [#allocation3], 16384  }
  0x12   :  { %1452 = vsyncadd [#allocation3], 4294950912  ;;  %v1456_v0 = vmov 0.0|0.0   ;;  %vm1457_vm0 = vmmov 0   ;;  %v1458_v1 = vmov 0.0   ;;  %v29_v2 = vld [vmem:[#allocation2] sm:$0xff] }
  0x13   :  { %1231 = vmatprep.subr.bf16.mxu0 %v1456_v0  ;;  %983 = vmatprep.mubr.msk.f32.mxu0 %vm1457_vm0, %v1458_v1  ;;  %v30_v3 = vld [vmem:[#allocation2 + $0x8] sm:$0xff]  ;;  %v31_v4 = vld [vmem:[#allocation2 + $0x10] sm:$0xff]  ;;  %v32_v6 = vld [vmem:[#allocation2 + $0x18] sm:$0xff] }
  0x14   :  { %1255 = vmatprep.subr.bf16.mxu1 %v1456_v0  ;;  %1018 = vmatprep.mubr.msk.f32.mxu1 %vm1457_vm0, %v1458_v1  ;;  %v1232_v5 = vpack.c.bf16 %v30_v3, %v29_v2  ;;  %v1235_v7 = vpack.c.bf16 %v32_v6, %v31_v4  ;;  %v33_v8 = vld [vmem:[#allocation2 + $0x20] sm:$0xff]  ;;  %v34_v9 = vld [vmem:[#allocation2 + $0x28] sm:$0xff]  ;;  %v126_v12 = vld [vmem:[#allocation2 + $0x90] sm:$0xff] }
  0x15   :  { %v124_v10 = vld [vmem:[#allocation2 + $0x80] sm:$0xff]  ;;  %v125_v11 = vld [vmem:[#allocation2 + $0x88] sm:$0xff]  ;;  %v127_v13 = vld [vmem:[#allocation2 + $0x98] sm:$0xff]  ;;  %v1238_v14 = vpack.c.bf16 %v34_v9, %v33_v8 }
  0x16   :  { %1233 = vmatpush3.bf16.msra.mxu0 %v1232_v5  ;;  %v1256_v15 = vpack.c.bf16 %v125_v11, %v124_v10  ;;  %v35_v16 = vld [vmem:[#allocation2 + $0x30] sm:$0xff]  ;;  %v36_v17 = vld [vmem:[#allocation2 + $0x38] sm:$0xff]  ;;  %v1259_v18 = vpack.c.bf16 %v127_v13, %v126_v12  ;;  %v128_v19 = vld [vmem:[#allocation2 + $0xa0] sm:$0xff] }
  0x17   :  { %1234 = vmatprep.subr.bf16.mxu0 %v1456_v0  ;;  %v129_v20 = vld [vmem:[#allocation2 + $0xa8] sm:$0xff]  ;;  %v1241_v21 = vpack.c.bf16 %v36_v17, %v35_v16  ;;  %v37_v22 = vld [vmem:[#allocation2 + $0x40] sm:$0xff]  ;;  %v130_v25 = vld [vmem:[#allocation2 + $0xb0] sm:$0xff] }
  0x18   :  { %1257 = vmatpush3.bf16.msra.mxu1 %v1256_v15  ;;  %v38_v23 = vld [vmem:[#allocation2 + $0x48] sm:$0xff]  ;;  %v1262_v24 = vpack.c.bf16 %v129_v20, %v128_v19  ;;  %v131_v26 = vld [vmem:[#allocation2 + $0xb8] sm:$0xff]  ;;  %v39_v28 = vld [vmem:[#allocation2 + $0x50] sm:$0xff] }
  0x19   :  { %1258 = vmatprep.subr.bf16.mxu1 %v1456_v0  ;;  %v1244_v27 = vpack.c.bf16 %v38_v23, %v37_v22  ;;  %v40_v29 = vld [vmem:[#allocation2 + $0x58] sm:$0xff]  ;;  %v1265_v30 = vpack.c.bf16 %v131_v26, %v130_v25  ;;  %v132_v31 = vld [vmem:[#allocation2 + $0xc0] sm:$0xff]  ;;  %v133_v32 = vld [vmem:[#allocation2 + $0xc8] sm:$0xff] }
  0x1a   :  { %1236 = vmatpush3.bf16.msra.mxu0 %v1235_v7  ;;  %v1247_v33 = vpack.c.bf16 %v40_v29, %v39_v28  ;;  %v41_v34 = vld [vmem:[#allocation2 + $0x60] sm:$0xff]  ;;  %v42_v35 = vld [vmem:[#allocation2 + $0x68] sm:$0xff]  ;;  %v1268_v36 = vpack.c.bf16 %v133_v32, %v132_v31  ;;  %v134_v37 = vld [vmem:[#allocation2 + $0xd0] sm:$0xff] }
  0x1b   :  { %1237 = vmatprep.subr.bf16.mxu0 %v1456_v0  ;;  %v135_v38 = vld [vmem:[#allocation2 + $0xd8] sm:$0xff]  ;;  %v1250_v39 = vpack.c.bf16 %v42_v35, %v41_v34  ;;  %v43_v40 = vld [vmem:[#allocation2 + $0x70] sm:$0xff]  ;;  %v136_v43 = vld [vmem:[#allocation2 + $0xe0] sm:$0xff] }
  0x1c   :  { %1260 = vmatpush3.bf16.msra.mxu1 %v1259_v18  ;;  %v44_v41 = vld [vmem:[#allocation2 + $0x78] sm:$0xff]  ;;  %v1271_v42 = vpack.c.bf16 %v135_v38, %v134_v37  ;;  %v137_v44 = vld [vmem:[#allocation2 + $0xe8] sm:$0xff]  ;;  %v28_v47 = vld [vmem:[%s1601_s0] sm:$0xff] }
  0x1d   :  { %1261 = vmatprep.subr.bf16.mxu1 %v1456_v0  ;;  %v1253_v45 = vpack.c.bf16 %v44_v41, %v43_v40  ;;  %v1274_v46 = vpack.c.bf16 %v137_v44, %v136_v43  ;;  %v138_v48 = vld [vmem:[#allocation2 + $0xf0] sm:$0xff]  ;;  %v139_v49 = vld [vmem:[#allocation2 + $0xf8] sm:$0xff]  ;;  %v220_v51 = vld [vmem:[#allocation2 + $0x100] sm:$0xff] }
  0x1e   :  { %1239 = vmatpush3.bf16.msra.mxu0 %v1238_v14  ;;  %v1277_v50 = vpack.c.bf16 %v139_v49, %v138_v48  ;;  %v221_v52 = vld [vmem:[#allocation2 + $0x108] sm:$0xff]  ;;  %v222_v53 = vld [vmem:[#allocation2 + $0x110] sm:$0xff]  ;;  %v223_v55 = vld [vmem:[#allocation2 + $0x118] sm:$0xff] }
  0x1f   :  { %1240 = vmatprep.subr.bf16.mxu0 %v1456_v0  ;;  %v1280_v54 = vpack.c.bf16 %v221_v52, %v220_v51  ;;  %v1283_v56 = vpack.c.bf16 %v223_v55, %v222_v53  ;;  %v224_v57 = vld [vmem:[#allocation2 + $0x120] sm:$0xff]  ;;  %v225_v58 = vld [vmem:[#allocation2 + $0x128] sm:$0xff]  ;;  %v226_v60 = vld [vmem:[#allocation2 + $0x130] sm:$0xff] }
  0x20   :  { %1263 = vmatpush3.bf16.msra.mxu1 %v1262_v24  ;;  %v1286_v59 = vpack.c.bf16 %v225_v58, %v224_v57  ;;  %v227_v61 = vld [vmem:[#allocation2 + $0x138] sm:$0xff]  ;;  %v228_v63 = vld [vmem:[#allocation2 + $0x140] sm:$0xff]  ;;  %v229_v2 = vld [vmem:[#allocation2 + $0x148] sm:$0xff] }
  0x21   :  { %1264 = vmatprep.subr.bf16.mxu1 %v1456_v0  ;;  %v1289_v62 = vpack.c.bf16 %v227_v61, %v226_v60  ;;  %v1292_v3 = vpack.c.bf16 %v229_v2, %v228_v63  ;;  %v230_v4 = vld [vmem:[#allocation2 + $0x150] sm:$0xff]  ;;  %v231_v5 = vld [vmem:[#allocation2 + $0x158] sm:$0xff]  ;;  %v232_v7 = vld [vmem:[#allocation2 + $0x160] sm:$0xff] }
  0x22   :  { %1242 = vmatpush3.bf16.msra.mxu0 %v1241_v21  ;;  %v1295_v6 = vpack.c.bf16 %v231_v5, %v230_v4  ;;  %v233_v8 = vld [vmem:[#allocation2 + $0x168] sm:$0xff]  ;;  %v800_v10 = vld [vmem:[%s1603_s2] ss:$0 sm:$0xff]  ;;  %v234_v15 = vld [vmem:[#allocation2 + $0x170] sm:$0xff] }
  0x23   :  { %1243 = vmatprep.subr.bf16.mxu0 %v1456_v0  ;;  %v1298_v9 = vpack.c.bf16 %v233_v8, %v232_v7  ;;  %v235_v16 = vld [vmem:[#allocation2 + $0x178] sm:$0xff]  ;;  %v316_v18 = vld [vmem:[#allocation2 + $0x180] sm:$0xff]  ;;  %v317_v19 = vld [vmem:[#allocation2 + $0x188] sm:$0xff] }
  0x24   :  { %1266 = vmatpush3.bf16.msra.mxu1 %v1265_v30  ;;  %v1301_v17 = vpack.c.bf16 %v235_v16, %v234_v15  ;;  %v318_v20 = vld [vmem:[#allocation2 + $0x190] sm:$0xff]  ;;  %v1304_v21 = vpack.c.bf16 %v317_v19, %v316_v18  ;;  %v319_v22 = vld [vmem:[#allocation2 + $0x198] sm:$0xff]  ;;  %v320_v24 = vld [vmem:[#allocation2 + $0x1a0] sm:$0xff] }
  0x25   :  { %1267 = vmatprep.subr.bf16.mxu1 %v1456_v0  ;;  %v1307_v23 = vpack.c.bf16 %v319_v22, %v318_v20  ;;  %v321_v25 = vld [vmem:[#allocation2 + $0x1a8] sm:$0xff]  ;;  %v323_v28 = vld [vmem:[#allocation2 + $0x1b8] sm:$0xff]  ;;  %v324_v30 = vld [vmem:[#allocation2 + $0x1c0] sm:$0xff] }
  0x26   :  { %1245 = vmatpush3.bf16.msra.mxu0 %v1244_v27  ;;  %v1310_v26 = vpack.c.bf16 %v321_v25, %v320_v24  ;;  %v322_v27 = vld [vmem:[#allocation2 + $0x1b0] sm:$0xff]  ;;  %v325_v31 = vld [vmem:[#allocation2 + $0x1c8] sm:$0xff]  ;;  %v327_v34 = vld [vmem:[#allocation2 + $0x1d8] sm:$0xff] }
  0x27   :  { %1246 = vmatprep.subr.bf16.mxu0 %v1456_v0  ;;  %v1313_v29 = vpack.c.bf16 %v323_v28, %v322_v27  ;;  %v1316_v32 = vpack.c.bf16 %v325_v31, %v324_v30  ;;  %v329_v37 = vld [vmem:[#allocation2 + $0x1e8] sm:$0xff]  ;;  %v330_v44 = vld [vmem:[#allocation2 + $0x1f0] sm:$0xff]  ;;  %v415_v51 = vld [vmem:[#allocation2 + $0x218] sm:$0xff] }
  0x28   :  { %1269 = vmatpush3.bf16.msra.mxu1 %v1268_v36  ;;  %v328_v36 = vld [vmem:[#allocation2 + $0x1e0] sm:$0xff]  ;;  %v413_v48 = vld [vmem:[#allocation2 + $0x208] sm:$0xff]  ;;  %v414_v49 = vld [vmem:[#allocation2 + $0x210] sm:$0xff] }
  0x29   :  { %1270 = vmatprep.subr.bf16.mxu1 %v1456_v0  ;;  %v1322_v38 = vpack.c.bf16 %v329_v37, %v328_v36  ;;  %v1331_v52 = vpack.c.bf16 %v415_v51, %v414_v49  ;;  %v416_v53 = vld [vmem:[#allocation2 + $0x220] sm:$0xff]  ;;  %v419_v57 = vld [vmem:[#allocation2 + $0x238] sm:$0xff]  ;;  %v421_v60 = vld [vmem:[#allocation2 + $0x248] sm:$0xff] }
  0x2a   :  { %1248 = vmatpush3.bf16.msra.mxu0 %v1247_v33  ;;  %v326_v33 = vld [vmem:[#allocation2 + $0x1d0] sm:$0xff]  ;;  %v423_v63 = vld [vmem:[#allocation2 + $0x258] sm:$0xff]  ;;  %v425_v4 = vld [vmem:[#allocation2 + $0x268] sm:$0xff] }
  0x2b   :  { %1249 = vmatprep.subr.bf16.mxu0 %v1456_v0  ;;  %v1319_v35 = vpack.c.bf16 %v327_v34, %v326_v33  ;;  %v509_v15 = vld [vmem:[#allocation2 + $0x288] sm:$0xff]  ;;  %v510_v16 = vld [vmem:[#allocation2 + $0x290] sm:$0xff]  ;;  %v511_v18 = vld [vmem:[#allocation2 + $0x298] sm:$0xff] }
  0x2c   :  { %1272 = vmatpush3.bf16.msra.mxu1 %v1271_v42  ;;  %v1355_v19 = vpack.c.bf16 %v511_v18, %v510_v16  ;;  %v512_v20 = vld [vmem:[#allocation2 + $0x2a0] sm:$0xff]  ;;  %v515_v24 = vld [vmem:[#allocation2 + $0x2b8] sm:$0xff]  ;;  %v517_v27 = vld [vmem:[#allocation2 + $0x2c8] sm:$0xff] }
  0x2d   :  { %1273 = vmatprep.subr.bf16.mxu1 %v1456_v0  ;;  %v519_v30 = vld [vmem:[#allocation2 + $0x2d8] sm:$0xff]  ;;  %v521_v33 = vld [vmem:[#allocation2 + $0x2e8] sm:$0xff]  ;;  %v608_v49 = vld [vmem:[#allocation2 + $0x320] sm:$0xff] }
  0x2e   :  { %1251 = vmatpush3.bf16.msra.mxu0 %v1250_v39  ;;  %v802_v39 = vld [vmem:[%s1603_s2 + $0x1] ss:$0 sm:$0xff] }
  0x2f   :  { %1252 = vmatprep.subr.bf16.mxu0 %v1456_v0  ;;  %v704_v16 = vld [vmem:[#allocation2 + $0x3a0] sm:$0xff] }
  0x30   :  { %1275 = vmatpush3.bf16.msra.mxu1 %v1274_v46 }
  0x31   :  { %1276 = vmatprep.subr.bf16.mxu1 %v1456_v0 }
  0x32   :  { %1254 = vmatpush3.bf16.msra.mxu0 %v1253_v45  ;;  %v331_v45 = vld [vmem:[#allocation2 + $0x1f8] sm:$0xff] }
  0x33   :  { %1279 = vmatprep.subr.bf16.mxu0 %v1456_v0  ;;  %v1325_v46 = vpack.c.bf16 %v331_v45, %v330_v44  ;;  %v605_v44 = vld [vmem:[#allocation2 + $0x308] sm:$0xff]  ;;  %v606_v45 = vld [vmem:[#allocation2 + $0x310] sm:$0xff] }
  0x34   :  { %1278 = vmatpush3.bf16.msra.mxu1 %v1277_v50 }
  0x35   :  { %984 = vmatmul.mubr.f32.vlgmr.msra.gmra.mrb[0].mxu0 %v28_v47  ;;  %1303 = vmatprep.subr.bf16.mxu1 %v1456_v0  ;;  %v412_v47 = vld [vmem:[#allocation2 + $0x200] sm:$0xff] }
  0x36   :  { %1053 = vmatprep.mubr.msk.f32.mxu0 %vm1457_vm0, %v1458_v1  ;;  %1281 = vmatpush3.bf16.msra.mxu0 %v1280_v54  ;;  %v1328_v50 = vpack.c.bf16 %v413_v48, %v412_v47  ;;  %v417_v54 = vld [vmem:[#allocation2 + $0x228] sm:$0xff]  ;;  %v607_v47 = vld [vmem:[#allocation2 + $0x318] sm:$0xff] }
  0x37   :  { %1282 = vmatprep.subr.bf16.mxu0 %v1456_v0  ;;  %v1334_v55 = vpack.c.bf16 %v417_v54, %v416_v53  ;;  %v1379_v48 = vpack.c.bf16 %v607_v47, %v606_v45  ;;  %v611_v53 = vld [vmem:[#allocation2 + $0x338] sm:$0xff] }
  0x3a   :  { %1284 = vmatpush3.bf16.msra.mxu0 %v1283_v56  ;;  %v418_v56 = vld [vmem:[#allocation2 + $0x230] sm:$0xff] }
  0x3b   :  { %1285 = vmatprep.subr.bf16.mxu0 %v1456_v0  ;;  %v1337_v58 = vpack.c.bf16 %v419_v57, %v418_v56  ;;  %v613_v56 = vld [vmem:[#allocation2 + $0x348] sm:$0xff] }
  0x3e   :  { %1287 = vmatpush3.bf16.msra.mxu0 %v1286_v59  ;;  %v420_v59 = vld [vmem:[#allocation2 + $0x240] sm:$0xff] }
  0x3f   :  { %1288 = vmatprep.subr.bf16.mxu0 %v1456_v0  ;;  %v1340_v61 = vpack.c.bf16 %v421_v60, %v420_v59  ;;  %v615_v59 = vld [vmem:[#allocation2 + $0x358] sm:$0xff] }
  0x42   :  { %1290 = vmatpush3.bf16.msra.mxu0 %v1289_v62  ;;  %v422_v62 = vld [vmem:[#allocation2 + $0x250] sm:$0xff] }
  0x43   :  { %1291 = vmatprep.subr.bf16.mxu0 %v1456_v0  ;;  %v1343_v2 = vpack.c.bf16 %v423_v63, %v422_v62  ;;  %v617_v62 = vld [vmem:[#allocation2 + $0x368] sm:$0xff] }
  0x46   :  { %1293 = vmatpush3.bf16.msra.mxu0 %v1292_v3  ;;  %v424_v3 = vld [vmem:[#allocation2 + $0x260] sm:$0xff] }
  0x47   :  { %1294 = vmatprep.subr.bf16.mxu0 %v1456_v0  ;;  %v1346_v5 = vpack.c.bf16 %v425_v4, %v424_v3 }
  0x4a   :  { %1296 = vmatpush3.bf16.msra.mxu0 %v1295_v6  ;;  %v804_v6 = vld [vmem:[%s1603_s2 + $0x2] ss:$0 sm:$0xff] }
  0x4b   :  { %1297 = vmatprep.subr.bf16.mxu0 %v1456_v0 }
  0x4e   :  { %1299 = vmatpush3.bf16.msra.mxu0 %v1298_v9 }
  0x4f   :  { %1300 = vmatprep.subr.bf16.mxu0 %v1456_v0 }
  0x52   :  { %1302 = vmatpush3.bf16.msra.mxu0 %v1301_v17 }
  0x53   :  { %1327 = vmatprep.subr.bf16.mxu0 %v1456_v0 }
 0x108   :  { %v118_v11 = vpop.f32.mrb[0].mxu0 }
 0x109   :  { %v119_v12 = vadd.f32 %v800_v10, %v118_v11  ;;  %v985_v13 = vpop.f32.mrb[1].mxu0  ;;  %v426_v11 = vld [vmem:[#allocation2 + $0x270] sm:$0xff] }
 0x10b   :  { %v122_v14 = vmax.f32 %v119_v12, 0.0  ;;  %v427_v12 = vld [vmem:[#allocation2 + $0x278] sm:$0xff] }
 0x10c   :  { %v1349_v13 = vpack.c.bf16 %v427_v12, %v426_v11  ;;  %v701_v11 = vld [vmem:[#allocation2 + $0x388] sm:$0xff]  ;;  %v702_v12 = vld [vmem:[#allocation2 + $0x390] sm:$0xff] }
 0x10d   :  { %1019 = vmatmul.mubr.f32.vlgmr.msra.gmra.mrb[0].mxu1 %v122_v14  ;;  %v508_v14 = vld [vmem:[#allocation2 + $0x280] sm:$0xff] }
 0x10e   :  { %1088 = vmatprep.mubr.msk.f32.mxu1 %vm1457_vm0, %v1458_v1  ;;  %1305 = vmatpush3.bf16.msra.mxu1 %v1304_v21  ;;  %v1352_v17 = vpack.c.bf16 %v509_v15, %v508_v14  ;;  %v513_v21 = vld [vmem:[#allocation2 + $0x2a8] sm:$0xff]  ;;  %v703_v14 = vld [vmem:[#allocation2 + $0x398] sm:$0xff] }
 0x10f   :  { %1306 = vmatprep.subr.bf16.mxu1 %v1456_v0  ;;  %v1358_v22 = vpack.c.bf16 %v513_v21, %v512_v20  ;;  %v1403_v15 = vpack.c.bf16 %v703_v14, %v702_v12  ;;  %v708_v21 = vld [vmem:[#allocation2 + $0x3c0] sm:$0xff] }
 0x112   :  { %1308 = vmatpush3.bf16.msra.mxu1 %v1307_v23  ;;  %v514_v23 = vld [vmem:[#allocation2 + $0x2b0] sm:$0xff] }
 0x113   :  { %1309 = vmatprep.subr.bf16.mxu1 %v1456_v0  ;;  %v1361_v25 = vpack.c.bf16 %v515_v24, %v514_v23  ;;  %v710_v24 = vld [vmem:[#allocation2 + $0x3d0] sm:$0xff] }
 0x116   :  { %1311 = vmatpush3.bf16.msra.mxu1 %v1310_v26  ;;  %v516_v26 = vld [vmem:[#allocation2 + $0x2c0] sm:$0xff] }
 0x117   :  { %1312 = vmatprep.subr.bf16.mxu1 %v1456_v0  ;;  %v1364_v28 = vpack.c.bf16 %v517_v27, %v516_v26  ;;  %v712_v27 = vld [vmem:[#allocation2 + $0x3e0] sm:$0xff] }
 0x11a   :  { %1314 = vmatpush3.bf16.msra.mxu1 %v1313_v29  ;;  %v518_v29 = vld [vmem:[#allocation2 + $0x2d0] sm:$0xff] }
 0x11b   :  { %1315 = vmatprep.subr.bf16.mxu1 %v1456_v0  ;;  %v1367_v31 = vpack.c.bf16 %v519_v30, %v518_v29  ;;  %v810_v30 = vld [vmem:[%s1603_s2 + $0x5] ss:$0 sm:$0xff] }
 0x11e   :  { %1317 = vmatpush3.bf16.msra.mxu1 %v1316_v32  ;;  %v520_v32 = vld [vmem:[#allocation2 + $0x2e0] sm:$0xff] }
 0x11f   :  { %1318 = vmatprep.subr.bf16.mxu1 %v1456_v0  ;;  %v1370_v34 = vpack.c.bf16 %v521_v33, %v520_v32 }
 0x122   :  { %1320 = vmatpush3.bf16.msra.mxu1 %v1319_v35  ;;  %v806_v35 = vld [vmem:[%s1603_s2 + $0x3] ss:$0 sm:$0xff] }
 0x123   :  { %1321 = vmatprep.subr.bf16.mxu1 %v1456_v0 }
 0x126   :  { %1323 = vmatpush3.bf16.msra.mxu1 %v1322_v38 }
 0x127   :  { %1324 = vmatprep.subr.bf16.mxu1 %v1456_v0 }
 0x12a   :  { %1326 = vmatpush3.bf16.msra.mxu1 %v1325_v46 }
 0x12b   :  { %1351 = vmatprep.subr.bf16.mxu1 %v1456_v0 }
 0x1e0   :  { %v214_v40 = vpop.f32.mrb[0].mxu1 }
 0x1e1   :  { %v215_v41 = vadd.f32 %v802_v39, %v214_v40  ;;  %v1020_v42 = vpop.f32.mrb[1].mxu1  ;;  %v522_v40 = vld [vmem:[#allocation2 + $0x2f0] sm:$0xff] }
 0x1e3   :  { %v218_v43 = vmax.f32 %v215_v41, 0.0  ;;  %v523_v41 = vld [vmem:[#allocation2 + $0x2f8] sm:$0xff] }
 0x1e4   :  { %v1373_v42 = vpack.c.bf16 %v523_v41, %v522_v40 }
 0x1e5   :  { %1054 = vmatmul.mubr.f32.vlgmr.msra.gmra.mrb[2].mxu0 %v218_v43  ;;  %v604_v43 = vld [vmem:[#allocation2 + $0x300] sm:$0xff] }
 0x1e6   :  { %1123 = vmatprep.mubr.msk.f32.mxu0 %vm1457_vm0, %v1458_v1  ;;  %1329 = vmatpush3.bf16.msra.mxu0 %v1328_v50  ;;  %v1376_v46 = vpack.c.bf16 %v605_v44, %v604_v43  ;;  %v609_v50 = vld [vmem:[#allocation2 + $0x328] sm:$0xff] }
 0x1e7   :  { %1330 = vmatprep.subr.bf16.mxu0 %v1456_v0  ;;  %v1382_v51 = vpack.c.bf16 %v609_v50, %v608_v49 }
 0x1ea   :  { %1332 = vmatpush3.bf16.msra.mxu0 %v1331_v52  ;;  %v610_v52 = vld [vmem:[#allocation2 + $0x330] sm:$0xff] }
 0x1eb   :  { %1333 = vmatprep.subr.bf16.mxu0 %v1456_v0  ;;  %v1385_v54 = vpack.c.bf16 %v611_v53, %v610_v52 }
 0x1ee   :  { %1335 = vmatpush3.bf16.msra.mxu0 %v1334_v55  ;;  %v612_v55 = vld [vmem:[#allocation2 + $0x340] sm:$0xff] }
 0x1ef   :  { %1336 = vmatprep.subr.bf16.mxu0 %v1456_v0  ;;  %v1388_v57 = vpack.c.bf16 %v613_v56, %v612_v55 }
 0x1f2   :  { %1338 = vmatpush3.bf16.msra.mxu0 %v1337_v58  ;;  %v614_v58 = vld [vmem:[#allocation2 + $0x350] sm:$0xff] }
 0x1f3   :  { %1339 = vmatprep.subr.bf16.mxu0 %v1456_v0  ;;  %v1391_v60 = vpack.c.bf16 %v615_v59, %v614_v58 }
 0x1f6   :  { %1341 = vmatpush3.bf16.msra.mxu0 %v1340_v61  ;;  %v616_v61 = vld [vmem:[#allocation2 + $0x360] sm:$0xff] }
 0x1f7   :  { %1342 = vmatprep.subr.bf16.mxu0 %v1456_v0  ;;  %v1394_v63 = vpack.c.bf16 %v617_v62, %v616_v61 }
 0x1fa   :  { %1344 = vmatpush3.bf16.msra.mxu0 %v1343_v2  ;;  %v808_v2 = vld [vmem:[%s1603_s2 + $0x4] ss:$0 sm:$0xff] }
 0x1fb   :  { %1345 = vmatprep.subr.bf16.mxu0 %v1456_v0 }
 0x1fe   :  { %1347 = vmatpush3.bf16.msra.mxu0 %v1346_v5 }
 0x1ff   :  { %1348 = vmatprep.subr.bf16.mxu0 %v1456_v0 }
 0x202   :  { %1350 = vmatpush3.bf16.msra.mxu0 %v1349_v13 }
 0x203   :  { %1375 = vmatprep.subr.bf16.mxu0 %v1456_v0 }
 0x2b8   :  { %v310_v7 = vpop.f32.mrb[2].mxu0 }
 0x2b9   :  { %v311_v8 = vadd.f32 %v804_v6, %v310_v7  ;;  %v1055_v9 = vpop.f32.mrb[3].mxu0  ;;  %v618_v7 = vld [vmem:[#allocation2 + $0x370] sm:$0xff] }
 0x2bb   :  { %v314_v10 = vmax.f32 %v311_v8, 0.0  ;;  %v619_v8 = vld [vmem:[#allocation2 + $0x378] sm:$0xff] }
 0x2bc   :  { %v1397_v9 = vpack.c.bf16 %v619_v8, %v618_v7 }
 0x2bd   :  { %1089 = vmatmul.mubr.f32.vlgmr.msra.gmra.mrb[2].mxu1 %v314_v10  ;;  %v700_v10 = vld [vmem:[#allocation2 + $0x380] sm:$0xff] }
 0x2be   :  { %1158 = vmatprep.mubr.msk.f32.mxu1 %vm1457_vm0, %v1458_v1  ;;  %1353 = vmatpush3.bf16.msra.mxu1 %v1352_v17  ;;  %v1400_v13 = vpack.c.bf16 %v701_v11, %v700_v10  ;;  %v705_v17 = vld [vmem:[#allocation2 + $0x3a8] sm:$0xff] }
 0x2bf   :  { %1354 = vmatprep.subr.bf16.mxu1 %v1456_v0  ;;  %v1406_v18 = vpack.c.bf16 %v705_v17, %v704_v16 }
 0x2c2   :  { %1356 = vmatpush3.bf16.msra.mxu1 %v1355_v19  ;;  %v707_v19 = vld [vmem:[#allocation2 + $0x3b8] sm:$0xff] }
 0x2c3   :  { %1357 = vmatprep.subr.bf16.mxu1 %v1456_v0 }
 0x2c6   :  { %1359 = vmatpush3.bf16.msra.mxu1 %v1358_v22  ;;  %v709_v22 = vld [vmem:[#allocation2 + $0x3c8] sm:$0xff] }
 0x2c7   :  { %1360 = vmatprep.subr.bf16.mxu1 %v1456_v0  ;;  %v1412_v23 = vpack.c.bf16 %v709_v22, %v708_v21 }
 0x2ca   :  { %1362 = vmatpush3.bf16.msra.mxu1 %v1361_v25  ;;  %v711_v25 = vld [vmem:[#allocation2 + $0x3d8] sm:$0xff] }
 0x2cb   :  { %1363 = vmatprep.subr.bf16.mxu1 %v1456_v0  ;;  %v1415_v26 = vpack.c.bf16 %v711_v25, %v710_v24 }
 0x2ce   :  { %1365 = vmatpush3.bf16.msra.mxu1 %v1364_v28  ;;  %v713_v28 = vld [vmem:[#allocation2 + $0x3e8] sm:$0xff] }
 0x2cf   :  { %1366 = vmatprep.subr.bf16.mxu1 %v1456_v0  ;;  %v1418_v29 = vpack.c.bf16 %v713_v28, %v712_v27 }
 0x2d2   :  { %1368 = vmatpush3.bf16.msra.mxu1 %v1367_v31 }
 0x2d3   :  { %1369 = vmatprep.subr.bf16.mxu1 %v1456_v0 }
 0x2d6   :  { %1371 = vmatpush3.bf16.msra.mxu1 %v1370_v34 }
 0x2d7   :  { %1372 = vmatprep.subr.bf16.mxu1 %v1456_v0 }
 0x2da   :  { %1374 = vmatpush3.bf16.msra.mxu1 %v1373_v42  ;;  %v814_v42 = vld [vmem:[%s1603_s2 + $0x7] ss:$0 sm:$0xff] }
 0x2db   :  { %1399 = vmatprep.subr.bf16.mxu1 %v1456_v0 }
 0x390   :  { %v406_v36 = vpop.f32.mrb[2].mxu1 }
 0x391   :  { %v407_v37 = vadd.f32 %v806_v35, %v406_v36  ;;  %v1090_v38 = vpop.f32.mrb[3].mxu1  ;;  %v714_v35 = vld [vmem:[#allocation2 + $0x3f0] sm:$0xff]  ;;  %v715_v36 = vld [vmem:[#allocation2 + $0x3f8] sm:$0xff] }
 0x392   :  { %v812_v38 = vld [vmem:[%s1603_s2 + $0x6] ss:$0 sm:$0xff] }
 0x393   :  { %v410_v39 = vmax.f32 %v407_v37, 0.0  ;;  %v1421_v37 = vpack.c.bf16 %v715_v36, %v714_v35 }
 0x395   :  { %1124 = vmatmul.mubr.f32.vlgmr.msra.gmra.mrb[4].mxu0 %v410_v39 }
 0x396   :  { %1193 = vmatprep.mubr.msk.f32.mxu0 %vm1457_vm0, %v1458_v1  ;;  %1377 = vmatpush3.bf16.msra.mxu0 %v1376_v46 }
 0x397   :  { %1378 = vmatprep.subr.bf16.mxu0 %v1456_v0 }
 0x39a   :  { %1380 = vmatpush3.bf16.msra.mxu0 %v1379_v48 }
 0x39b   :  { %1381 = vmatprep.subr.bf16.mxu0 %v1456_v0 }
 0x39e   :  { %1383 = vmatpush3.bf16.msra.mxu0 %v1382_v51 }
 0x39f   :  { %1384 = vmatprep.subr.bf16.mxu0 %v1456_v0 }
 0x3a2   :  { %1386 = vmatpush3.bf16.msra.mxu0 %v1385_v54 }
 0x3a3   :  { %1387 = vmatprep.subr.bf16.mxu0 %v1456_v0 }
 0x3a6   :  { %1389 = vmatpush3.bf16.msra.mxu0 %v1388_v57 }
 0x3a7   :  { %1390 = vmatprep.subr.bf16.mxu0 %v1456_v0 }
 0x3aa   :  { %1392 = vmatpush3.bf16.msra.mxu0 %v1391_v60 }
 0x3ab   :  { %1393 = vmatprep.subr.bf16.mxu0 %v1456_v0 }
 0x3ae   :  { %1395 = vmatpush3.bf16.msra.mxu0 %v1394_v63 }
 0x3af   :  { %1396 = vmatprep.subr.bf16.mxu0 %v1456_v0 }
 0x3b2   :  { %1398 = vmatpush3.bf16.msra.mxu0 %v1397_v9 }
 0x468   :  { %v502_v3 = vpop.f32.mrb[4].mxu0 }
 0x469   :  { %v503_v4 = vadd.f32 %v808_v2, %v502_v3  ;;  %v1125_v5 = vpop.f32.mrb[5].mxu0 }
 0x46b   :  { %v506_v6 = vmax.f32 %v503_v4, 0.0 }
 0x46d   :  { %1159 = vmatmul.mubr.f32.vlgmr.msra.gmra.mrb[4].mxu1 %v506_v6 }
 0x46e   :  { %1228 = vmatprep.mubr.msk.f32.mxu1 %vm1457_vm0, %v1458_v1  ;;  %1401 = vmatpush3.bf16.msra.mxu1 %v1400_v13  ;;  %v706_v1 = vld [vmem:[#allocation2 + $0x3b0] sm:$0xff] }
 0x46f   :  { %1402 = vmatprep.subr.bf16.mxu1 %v1456_v0  ;;  %v1409_v20 = vpack.c.bf16 %v707_v19, %v706_v1 }
 0x472   :  { %1404 = vmatpush3.bf16.msra.mxu1 %v1403_v15 }
 0x473   :  { %1405 = vmatprep.subr.bf16.mxu1 %v1456_v0 }
 0x476   :  { %1407 = vmatpush3.bf16.msra.mxu1 %v1406_v18 }
 0x477   :  { %1408 = vmatprep.subr.bf16.mxu1 %v1456_v0 }
 0x47a   :  { %1410 = vmatpush3.bf16.msra.mxu1 %v1409_v20 }
 0x47b   :  { %1411 = vmatprep.subr.bf16.mxu1 %v1456_v0 }
 0x47e   :  { %1413 = vmatpush3.bf16.msra.mxu1 %v1412_v23 }
 0x47f   :  { %1414 = vmatprep.subr.bf16.mxu1 %v1456_v0 }
 0x482   :  { %1416 = vmatpush3.bf16.msra.mxu1 %v1415_v26 }
 0x483   :  { %1417 = vmatprep.subr.bf16.mxu1 %v1456_v0 }
 0x486   :  { %1419 = vmatpush3.bf16.msra.mxu1 %v1418_v29 }
 0x487   :  { %1420 = vmatprep.subr.bf16.mxu1 %v1456_v0 }
 0x48a   :  { %1422 = vmatpush3.bf16.msra.mxu1 %v1421_v37 }
 0x540   :  { %v598_v31 = vpop.f32.mrb[4].mxu1 }
 0x541   :  { %v599_v32 = vadd.f32 %v810_v30, %v598_v31  ;;  %v1160_v33 = vpop.f32.mrb[5].mxu1 }
 0x543   :  { %v602_v34 = vmax.f32 %v599_v32, 0.0 }
 0x545   :  { %1194 = vmatmul.mubr.f32.vlgmr.msra.gmra.mrb[6].mxu0 %v602_v34 }
 0x618   :  { %v694_v39 = vpop.f32.mrb[6].mxu0 }
 0x619   :  { %v695_v40 = vadd.f32 %v812_v38, %v694_v39  ;;  %v1195_v0 = vpop.f32.mrb[7].mxu0 }
 0x61b   :  { %v698_v41 = vmax.f32 %v695_v40, 0.0 }
 0x61d   :  { %1229 = vmatmul.mubr.f32.vlgmr.msra.gmra.mrb[6].mxu1 %v698_v41 }
 0x6f0   :  { %v790_v43 = vpop.f32.mrb[6].mxu1 }
 0x6f1   :  { %v791_v44 = vadd.f32 %v814_v42, %v790_v43  ;;  %v1230_v45 = vpop.f32.mrb[7].mxu1 }
 0x6f3   :  { %794 = vst [vmem:[%s1604_s3] sm:$0xff] %v791_v44 }
 0x6f4   :  { %799 = vsyncpa [#allocation3], 1 }

</bundles_post_ra>
